<compile_context>
chip_gen: v5e
topology: v5e:2x2
jax: 0.10.0
libtpu: 0.0.40
codegen_flags: <defaults>
</compile_context>

<pallas_src>
import jax
import jax.numpy as jnp
from jax.experimental import pallas as pl
from jax.experimental.pallas import tpu as pltpu


_LANE = 128
_TARGET_TILE_BYTES = 2 << 20   # per input tile (-> ~4 MiB in+out per grid step)
_MAX_TILE_BYTES = 4 << 20      # hard cap per input tile (VMEM budget, v7x-safe)


def _cdiv(a, b):
    return -(-a // b)


def _round_up(x, m):
    return ((x + m - 1) // m) * m


def _sublane_pack(itemsize):
    return {4: 8, 2: 16, 1: 32}.get(itemsize, 8)


def _attnmap_kernel(x_ref, w1_ref, b1_ref, w2_ref, b2_ref, o_ref):
    # x_ref / o_ref: (Bt, C, Tc) tile.  w1: (Cmid, C), w2: (C, Cmid),
    # b1: (Cmid, 1) f32, b2: (C, 1) f32.  Accumulation is always f32.
    bt = x_ref.shape[0]

    def one_image(b):
        x = x_ref[b]                                            # (C, Tc), native dtype
        h = jnp.dot(w1_ref[...], x,
                    preferred_element_type=jnp.float32) + b1_ref[...]
        h = h * jax.nn.sigmoid(h)                               # MemoryEfficientSwish fwd
        h = h.astype(w2_ref.dtype)                              # keep bf16 MXU path
        y = jnp.dot(w2_ref[...], h,
                    preferred_element_type=jnp.float32) + b2_ref[...]
        o_ref[b] = y.astype(o_ref.dtype)

    if bt <= 8:                       # static unroll: full LLO scheduler visibility
        for b in range(bt):
            one_image(b)
    else:                             # rolled in-kernel loop for larger batch blocks
        pl.loop(0, bt)(one_image)


def _choose_tiling(batch, channels, hw, itemsize):
    """Pick (images-per-step Bt, spatial columns Tc) to hit the HBM-per-step
    target while keeping >= 2 grid steps (megacore) and fitting VMEM."""
    image_bytes = channels * hw * itemsize

    if image_bytes <= _MAX_TILE_BYTES:
        # Whole image(s) per step: block over the batch axis.
        n_steps = max(2, _cdiv(batch * image_bytes, _TARGET_TILE_BYTES))
        bt = max(1, _cdiv(batch, n_steps))
        bt = min(bt, max(1, _MAX_TILE_BYTES // max(image_bytes, 1)), 16)
        if batch > 1:
            bt = min(bt, _cdiv(batch, 2))            # guarantee >= 2 grid steps
        tc = hw                                      # full-extent lane dim (legal)
        if _cdiv(batch, bt) == 1 and hw >= 2 * _LANE:
            # batch == 1 and a single tile: split spatially so both v7x cores run
            tc = _round_up(_cdiv(hw, 2), _LANE)
        return bt, tc

    # Large feature map: one image per step, balanced lane-dense spatial tiles.
    bytes_per_col = channels * itemsize
    max_cols = max(_LANE, (_MAX_TILE_BYTES // bytes_per_col) // _LANE * _LANE)
    tgt_cols = min(max(_LANE, (_TARGET_TILE_BYTES // bytes_per_col) // _LANE * _LANE),
                   max_cols)
    n_sp = _cdiv(hw, tgt_cols)
    tc = min(_round_up(_cdiv(hw, n_sp), _LANE), max_cols)
    if tc >= hw:
        tc = hw
    return 1, tc


def attn_map_pallas(x_nchw, w1, b1, w2, b2):
    """x_nchw: (B, C, H, W).  w1, w2: (C, C) = conv weight[:, :, 0, 0].  b1, b2: (C,)."""
    B, C, H, W = x_nchw.shape
    HW = H * W
    x3 = x_nchw.reshape(B, C, HW)                    # free view, no data movement

    x_item = jnp.dtype(x_nchw.dtype).itemsize
    w_item = jnp.dtype(w1.dtype).itemsize

    bt, tc = _choose_tiling(B, C, HW, x_item)
    grid = (_cdiv(B, bt), _cdiv(HW, tc))

    # Zero-pad the *hidden* channel dim to the sublane packing so the
    # intermediate swish tile is layout-aligned.  External channels stay C.
    c_mid = _round_up(C, _sublane_pack(min(4, w_item)))
    w1p = jnp.pad(w1, ((0, c_mid - C), (0, 0)))
    w2p = jnp.pad(w2, ((0, 0), (0, c_mid - C)))
    b1p = jnp.pad(b1.astype(jnp.float32).reshape(C, 1), ((0, c_mid - C), (0, 0)))
    b2p = b2.astype(jnp.float32).reshape(C, 1)

    # VMEM budget (padded to (sublane, 128) tiles): double-buffered x+out tiles,
    # f32 temporaries for the swish intermediate, weights (count 2 buffers in
    # case single-buffering is not honored).  Always set the scoped limit:
    # >= 32 MiB fixes v5e's 16 MiB default, <= 48 MiB stays v7x-safe.
    c_pad = _round_up(C, _sublane_pack(min(4, x_item)))
    tc_pad = _round_up(tc, _LANE)
    tile_bytes = bt * c_pad * tc_pad * x_item
    temp_bytes = 2 * bt * _round_up(c_mid, 8) * tc_pad * 4
    wgt_bytes = 2 * _round_up(c_mid, 8) * _round_up(C, _LANE) * w_item + 2 * c_mid * 4
    needed = 2 * 2 * tile_bytes + temp_bytes + 2 * wgt_bytes + (1 << 20)
    vmem_limit = int(min(max(needed * 5 // 4, 32 << 20), 48 << 20))

    cost = pl.CostEstimate(
        flops=int(4 * B * HW * C * c_mid + 4 * B * HW * c_mid),
        transcendentals=int(B * HW * c_mid),
        bytes_accessed=int(2 * B * HW * C * x_item + 2 * C * c_mid * w_item
                           + 4 * (C + c_mid)),
    )

    out_shape = jax.ShapeDtypeStruct((B, C, HW), x_nchw.dtype)

    def run(single_buffer_weights):
        if single_buffer_weights:
            # Constant-index weights/biases: one VMEM buffer is enough.
            wspec = lambda shp: pl.BlockSpec(shp, lambda i, j: (0, 0),
                                             pipeline_mode=pl.Buffered(1))
        else:
            wspec = lambda shp: pl.BlockSpec(shp, lambda i, j: (0, 0))
        grid_spec = pltpu.PrefetchScalarGridSpec(
            num_scalar_prefetch=0,
            grid=grid,
            in_specs=[
                pl.BlockSpec((bt, C, tc), lambda i, j: (i, 0, j)),   # x tile
                wspec((c_mid, C)),                                   # W1 (resident)
                wspec((c_mid, 1)),                                   # b1
                wspec((C, c_mid)),                                   # W2 (resident)
                wspec((C, 1)),                                       # b2
            ],
            out_specs=pl.BlockSpec((bt, C, tc), lambda i, j: (i, 0, j)),
        )
        return pl.pallas_call(
            _attnmap_kernel,
            out_shape=out_shape,
            grid_spec=grid_spec,
            compiler_params=pltpu.CompilerParams(
                dimension_semantics=("parallel", "parallel"),
                vmem_limit_bytes=vmem_limit),
            cost_estimate=cost,
        )(x3, w1p, b1p, w2p, b2p)

    try:
        out3 = run(single_buffer_weights=True)
    except Exception:
        # pipeline_mode / Buffered(1) not supported by this JAX build:
        # fall back to default double-buffered weight specs (still correct).
        out3 = run(single_buffer_weights=False)

    return out3.reshape(B, C, H, W)


def attn_map_reference(x_nchw, w1, b1, w2, b2):
    """Plain-JAX reference matching the PyTorch module semantics (NCHW in/out)."""
    x = x_nchw.astype(jnp.float32)
    h = (jnp.einsum("oc,bchw->bohw", w1.astype(jnp.float32), x)
         + b1.astype(jnp.float32)[None, :, None, None])
    h = h * jax.nn.sigmoid(h)
    y = (jnp.einsum("oc,bchw->bohw", w2.astype(jnp.float32), h)
         + b2.astype(jnp.float32)[None, :, None, None])
    return y.astype(x_nchw.dtype)


if __name__ == "__main__":
    # Small shapes consistent with AttnMap(dim): x is NCHW with C == dim.
    B, C, H, W = 2, 4, 16, 16

    key = jax.random.PRNGKey(0)
    kx, kw1, kb1, kw2, kb2 = jax.random.split(key, 5)

    x = jax.random.normal(kx, (B, C, H, W), dtype=jnp.float32)

    # Conv2d(dim, dim, 1) parameters with the 1x1 kernel squeezed: (out, in).
    w1 = jax.random.normal(kw1, (C, C), dtype=jnp.float32) * 0.1
    b1 = jax.random.normal(kb1, (C,), dtype=jnp.float32) * 0.1
    w2 = jax.random.normal(kw2, (C, C), dtype=jnp.float32) * 0.1
    b2 = jax.random.normal(kb2, (C,), dtype=jnp.float32) * 0.1

    out = attn_map_pallas(x, w1, b1, w2, b2)
    out = jax.block_until_ready(out)

    ref = attn_map_reference(x, w1, b1, w2, b2)
    assert out.shape == (B, C, H, W), out.shape
    # f32 path; loosen tolerance per-dtype if testing bf16 models.
    assert jnp.allclose(out, ref, atol=1e-5, rtol=1e-5), float(jnp.abs(out - ref).max())

    print("KERNEL_OK")
</pallas_src>

<mosaic_0001>
module attributes {stable_mosaic.version = 11 : i64} {
  func.func @_attnmap_kernel(%arg0: i32, %arg1: i32, %arg2: memref<1x4x256xf32, #tpu.memory_space<vmem>>, %arg3: memref<8x4xf32, #tpu.memory_space<vmem>>, %arg4: memref<8x1xf32, #tpu.memory_space<vmem>>, %arg5: memref<4x8xf32, #tpu.memory_space<vmem>>, %arg6: memref<4x1xf32, #tpu.memory_space<vmem>>, %arg7: memref<1x4x256xf32, #tpu.memory_space<vmem>>) attributes {dimension_semantics = [#tpu.dimension_semantics<parallel>, #tpu.dimension_semantics<parallel>], iteration_bounds = array<i64: 2, 1>, scalar_prefetch = 0 : i64, scratch_operands = 0 : i64, tpu.core_type = #tpu.core_type<tc>, window_params = [{transform_indices = @transform_0, window_bounds = array<i64: 1, 4, 256>}, {pipeline_mode = #tpu.pipeline_mode<synchronous>, transform_indices = @transform_1, window_bounds = array<i64: 8, 4>}, {pipeline_mode = #tpu.pipeline_mode<synchronous>, transform_indices = @transform_2, window_bounds = array<i64: 8, 1>}, {pipeline_mode = #tpu.pipeline_mode<synchronous>, transform_indices = @transform_3, window_bounds = array<i64: 4, 8>}, {pipeline_mode = #tpu.pipeline_mode<synchronous>, transform_indices = @transform_4, window_bounds = array<i64: 4, 1>}, {transform_indices = @transform_5, window_bounds = array<i64: 1, 4, 256>}]} {
    %c0 = arith.constant 0 : index
    %c0_0 = arith.constant 0 : index
    %c0_1 = arith.constant 0 : index
    %0 = vector.load %arg2[%c0, %c0_0, %c0_1] : memref<1x4x256xf32, #tpu.memory_space<vmem>>, vector<1x4x256xf32>
    %1 = vector.shape_cast %0 : vector<1x4x256xf32> to vector<4x256xf32>
    %c0_2 = arith.constant 0 : index
    %c0_3 = arith.constant 0 : index
    %2 = vector.load %arg3[%c0_2, %c0_3] : memref<8x4xf32, #tpu.memory_space<vmem>>, vector<8x4xf32>
    %cst = arith.constant dense<0.000000e+00> : vector<8x256xf32>
    %3 = tpu.matmul %2, %1, %cst {dimension_numbers = #tpu.dot_dimension_numbers<[1], [0], [0], [1], [0, 0, 1, 1], [], []>} : vector<8x4xf32>, vector<4x256xf32>, vector<8x256xf32> -> vector<8x256xf32>
    %c0_4 = arith.constant 0 : index
    %c0_5 = arith.constant 0 : index
    %4 = vector.load %arg4[%c0_4, %c0_5] : memref<8x1xf32, #tpu.memory_space<vmem>>, vector<8x1xf32>
    %5 = vector.broadcast %4 : vector<8x1xf32> to vector<8x256xf32>
    %6 = arith.addf %3, %5 : vector<8x256xf32>
    %7 = arith.negf %6 : vector<8x256xf32>
    %8 = math.exp %7 : vector<8x256xf32>
    %cst_6 = arith.constant 1.000000e+00 : f32
    %9 = vector.broadcast %cst_6 : f32 to vector<8x256xf32>
    %10 = arith.addf %9, %8 : vector<8x256xf32>
    %11 = arith.divf %9, %10 : vector<8x256xf32>
    %12 = arith.mulf %6, %11 : vector<8x256xf32>
    %c0_7 = arith.constant 0 : index
    %c0_8 = arith.constant 0 : index
    %13 = vector.load %arg5[%c0_7, %c0_8] : memref<4x8xf32, #tpu.memory_space<vmem>>, vector<4x8xf32>
    %cst_9 = arith.constant dense<0.000000e+00> : vector<4x256xf32>
    %14 = tpu.matmul %13, %12, %cst_9 {dimension_numbers = #tpu.dot_dimension_numbers<[1], [0], [0], [1], [0, 0, 1, 1], [], []>} : vector<4x8xf32>, vector<8x256xf32>, vector<4x256xf32> -> vector<4x256xf32>
    %c0_10 = arith.constant 0 : index
    %c0_11 = arith.constant 0 : index
    %15 = vector.load %arg6[%c0_10, %c0_11] : memref<4x1xf32, #tpu.memory_space<vmem>>, vector<4x1xf32>
    %16 = vector.broadcast %15 : vector<4x1xf32> to vector<4x256xf32>
    %17 = arith.addf %14, %16 : vector<4x256xf32>
    %c0_12 = arith.constant 0 : index
    %c0_13 = arith.constant 0 : index
    %c0_14 = arith.constant 0 : index
    %18 = vector.load %arg7[%c0_12, %c0_13, %c0_14] : memref<1x4x256xf32, #tpu.memory_space<vmem>>, vector<1x4x256xf32>
    %19 = vector.shape_cast %18 : vector<1x4x256xf32> to vector<4x256xf32>
    %20 = vector.shape_cast %17 : vector<4x256xf32> to vector<1x4x256xf32>
    tpu.vector_store %arg7[%c0_12, %c0_13, %c0_14], %20 {strides = array<i32>} : memref<1x4x256xf32, #tpu.memory_space<vmem>>, vector<1x4x256xf32>,
    return
  }
  func.func @transform_0(%arg0: i32, %arg1: i32) -> (i32, i32, i32) {
    %c0_i32 = arith.constant 0 : i32
    %c0_i32_0 = arith.constant 0 : i32
    return %arg0, %c0_i32, %arg1 : i32, i32, i32
  }
  func.func @transform_1(%arg0: i32, %arg1: i32) -> (i32, i32) {
    %c0_i32 = arith.constant 0 : i32
    %c0_i32_0 = arith.constant 0 : i32
    %c0_i32_1 = arith.constant 0 : i32
    return %c0_i32, %c0_i32_0 : i32, i32
  }
  func.func @transform_2(%arg0: i32, %arg1: i32) -> (i32, i32) {
    %c0_i32 = arith.constant 0 : i32
    %c0_i32_0 = arith.constant 0 : i32
    %c0_i32_1 = arith.constant 0 : i32
    return %c0_i32, %c0_i32_0 : i32, i32
  }
  func.func @transform_3(%arg0: i32, %arg1: i32) -> (i32, i32) {
    %c0_i32 = arith.constant 0 : i32
    %c0_i32_0 = arith.constant 0 : i32
    %c0_i32_1 = arith.constant 0 : i32
    return %c0_i32, %c0_i32_0 : i32, i32
  }
  func.func @transform_4(%arg0: i32, %arg1: i32) -> (i32, i32) {
    %c0_i32 = arith.constant 0 : i32
    %c0_i32_0 = arith.constant 0 : i32
    %c0_i32_1 = arith.constant 0 : i32
    return %c0_i32, %c0_i32_0 : i32, i32
  }
  func.func @transform_5(%arg0: i32, %arg1: i32) -> (i32, i32, i32) {
    %c0_i32 = arith.constant 0 : i32
    %c0_i32_0 = arith.constant 0 : i32
    return %arg0, %c0_i32, %arg1 : i32, i32, i32
  }
}

module attributes {stable_mosaic.version = 11 : i64} {
  func.func @_attnmap_kernel(%arg0: i32, %arg1: i32, %arg2: memref<1x4x256xf32, #tpu.memory_space<vmem>>, %arg3: memref<8x4xf32, #tpu.memory_space<vmem>>, %arg4: memref<8x1xf32, #tpu.memory_space<vmem>>, %arg5: memref<4x8xf32, #tpu.memory_space<vmem>>, %arg6: memref<4x1xf32, #tpu.memory_space<vmem>>, %arg7: memref<1x4x256xf32, #tpu.memory_space<vmem>>) attributes {dimension_semantics = [#tpu.dimension_semantics<parallel>, #tpu.dimension_semantics<parallel>], iteration_bounds = array<i64: 2, 1>, scalar_prefetch = 0 : i64, scratch_operands = 0 : i64, tpu.core_type = #tpu.core_type<tc>, window_params = [{transform_indices = @transform_0, window_bounds = array<i64: 1, 4, 256>}, {pipeline_mode = #tpu.pipeline_mode<synchronous>, transform_indices = @transform_1, window_bounds = array<i64: 8, 4>}, {pipeline_mode = #tpu.pipeline_mode<synchronous>, transform_indices = @transform_2, window_bounds = array<i64: 8, 1>}, {pipeline_mode = #tpu.pipeline_mode<synchronous>, transform_indices = @transform_3, window_bounds = array<i64: 4, 8>}, {pipeline_mode = #tpu.pipeline_mode<synchronous>, transform_indices = @transform_4, window_bounds = array<i64: 4, 1>}, {transform_indices = @transform_5, window_bounds = array<i64: 1, 4, 256>}]} {
    %c0 = arith.constant 0 : index
    %c0_0 = arith.constant 0 : index
    %c0_1 = arith.constant 0 : index
    %0 = vector.load %arg2[%c0, %c0_0, %c0_1] : memref<1x4x256xf32, #tpu.memory_space<vmem>>, vector<1x4x256xf32>
    %1 = vector.shape_cast %0 : vector<1x4x256xf32> to vector<4x256xf32>
    %c0_2 = arith.constant 0 : index
    %c0_3 = arith.constant 0 : index
    %2 = vector.load %arg3[%c0_2, %c0_3] : memref<8x4xf32, #tpu.memory_space<vmem>>, vector<8x4xf32>
    %cst = arith.constant dense<0.000000e+00> : vector<8x256xf32>
    %3 = tpu.matmul %2, %1, %cst {dimension_numbers = #tpu.dot_dimension_numbers<[1], [0], [0], [1], [0, 0, 1, 1], [], []>} : vector<8x4xf32>, vector<4x256xf32>, vector<8x256xf32> -> vector<8x256xf32>
    %c0_4 = arith.constant 0 : index
    %c0_5 = arith.constant 0 : index
    %4 = vector.load %arg4[%c0_4, %c0_5] : memref<8x1xf32, #tpu.memory_space<vmem>>, vector<8x1xf32>
    %5 = vector.broadcast %4 : vector<8x1xf32> to vector<8x256xf32>
    %6 = arith.addf %3, %5 : vector<8x256xf32>
    %7 = arith.negf %6 : vector<8x256xf32>
    %8 = math.exp %7 : vector<8x256xf32>
    %cst_6 = arith.constant 1.000000e+00 : f32
    %9 = vector.broadcast %cst_6 : f32 to vector<8x256xf32>
    %10 = arith.addf %9, %8 : vector<8x256xf32>
    %11 = arith.divf %9, %10 : vector<8x256xf32>
    %12 = arith.mulf %6, %11 : vector<8x256xf32>
    %c0_7 = arith.constant 0 : index
    %c0_8 = arith.constant 0 : index
    %13 = vector.load %arg5[%c0_7, %c0_8] : memref<4x8xf32, #tpu.memory_space<vmem>>, vector<4x8xf32>
    %cst_9 = arith.constant dense<0.000000e+00> : vector<4x256xf32>
    %14 = tpu.matmul %13, %12, %cst_9 {dimension_numbers = #tpu.dot_dimension_numbers<[1], [0], [0], [1], [0, 0, 1, 1], [], []>} : vector<4x8xf32>, vector<8x256xf32>, vector<4x256xf32> -> vector<4x256xf32>
    %c0_10 = arith.constant 0 : index
    %c0_11 = arith.constant 0 : index
    %15 = vector.load %arg6[%c0_10, %c0_11] : memref<4x1xf32, #tpu.memory_space<vmem>>, vector<4x1xf32>
    %16 = vector.broadcast %15 : vector<4x1xf32> to vector<4x256xf32>
    %17 = arith.addf %14, %16 : vector<4x256xf32>
    %c0_12 = arith.constant 0 : index
    %c0_13 = arith.constant 0 : index
    %c0_14 = arith.constant 0 : index
    %18 = vector.load %arg7[%c0_12, %c0_13, %c0_14] : memref<1x4x256xf32, #tpu.memory_space<vmem>>, vector<1x4x256xf32>
    %19 = vector.shape_cast %18 : vector<1x4x256xf32> to vector<4x256xf32>
    %20 = vector.shape_cast %17 : vector<4x256xf32> to vector<1x4x256xf32>
    tpu.vector_store %arg7[%c0_12, %c0_13, %c0_14], %20 {strides = array<i32>} : memref<1x4x256xf32, #tpu.memory_space<vmem>>, vector<1x4x256xf32>,
    return
  }
  func.func @transform_0(%arg0: i32, %arg1: i32) -> (i32, i32, i32) {
    %c0_i32 = arith.constant 0 : i32
    %c0_i32_0 = arith.constant 0 : i32
    return %arg0, %c0_i32, %arg1 : i32, i32, i32
  }
  func.func @transform_1(%arg0: i32, %arg1: i32) -> (i32, i32) {
    %c0_i32 = arith.constant 0 : i32
    %c0_i32_0 = arith.constant 0 : i32
    %c0_i32_1 = arith.constant 0 : i32
    return %c0_i32, %c0_i32_0 : i32, i32
  }
  func.func @transform_2(%arg0: i32, %arg1: i32) -> (i32, i32) {
    %c0_i32 = arith.constant 0 : i32
    %c0_i32_0 = arith.constant 0 : i32
    %c0_i32_1 = arith.constant 0 : i32
    return %c0_i32, %c0_i32_0 : i32, i32
  }
  func.func @transform_3(%arg0: i32, %arg1: i32) -> (i32, i32) {
    %c0_i32 = arith.constant 0 : i32
    %c0_i32_0 = arith.constant 0 : i32
    %c0_i32_1 = arith.constant 0 : i32
    return %c0_i32, %c0_i32_0 : i32, i32
  }
  func.func @transform_4(%arg0: i32, %arg1: i32) -> (i32, i32) {
    %c0_i32 = arith.constant 0 : i32
    %c0_i32_0 = arith.constant 0 : i32
    %c0_i32_1 = arith.constant 0 : i32
    return %c0_i32, %c0_i32_0 : i32, i32
  }
  func.func @transform_5(%arg0: i32, %arg1: i32) -> (i32, i32, i32) {
    %c0_i32 = arith.constant 0 : i32
    %c0_i32_0 = arith.constant 0 : i32
    return %arg0, %c0_i32, %arg1 : i32, i32, i32
  }
}

</mosaic_0001>

<bundles_post_ra>
// kernel: tpu_custom_call.1
= control target key start
LH: loop header
LB: loop body
LE: loop exit
PB: predicated region body
PF: predicated region fallthrough
CT: control target
= control target key end

     0   :  { %10 = vsyncpa [#allocation3], 0  ;;  %s818_s0 = inlined_call_operand.vmem [shape: f32[2,4,256], index: 0, kind: input, shape index: {}]   ;;  %s819_s1 = inlined_call_operand.vmem [shape: f32[8,4], index: 1, kind: input, shape index: {}]   ;;  %s820_s2 = inlined_call_operand.vmem [shape: f32[8,1], index: 2, kind: input, shape index: {}]   ;;  %s821_s3 = inlined_call_operand.vmem [shape: f32[4,8], index: 3, kind: input, shape index: {}]   ;;  %s822_s4 = inlined_call_operand.vmem [shape: f32[4,1], index: 4, kind: input, shape index: {}]   ;;  %s823_s5 = inlined_call_operand.hbm [shape: f32[2,4,256], index: 5, kind: output, shape index: {}]  }
   0x1   :  { %12 = vsyncpa [#allocation3 + $0x1], 0  ;;  %s706_s18 = smov 0   ;;  %s708_s19 = smov 0  }
   0x2   :  { %s710_s20 = smov 0   ;;  %s712_s21 = smov 0  }
   0x3   :  { %s714_s22 = smov 0   ;;  %s716_s23 = smov 0  }
   0x4 LB: > { %s507_s24 = sadd.s32 4294967295, %s673_s23   ;;  %s508_s25 = sadd.s32 4294967294, %s673_s23   ;;  %s673_s23 = sphi %s716_s23, %s18_s23   ;;  %s669_s22 = sphi %s714_s22, %s830_s22   ;;  %s665_s21 = sphi %s712_s21, %s829_s21   ;;  %s661_s20 = sphi %s710_s20, %s828_s20   ;;  %s657_s19 = sphi %s708_s19, %s827_s19   ;;  %s653_s18 = sphi %s706_s18, %s826_s18  }
   0x5   : > { %s30_s26 = sadd.s32 1, %s669_s22  ;;  %s151_s27 = sadd.s32 1, %s661_s20 }
   0x6   : > { %p32_p0 = scmp.ge.s32.totalorder %s30_s26, 2  ;;  %p161_p1 = scmp.ne.s32.totalorder %s661_s20, %s657_s19 }
   0x7   : > { %p162_p2 = scmp.eq.s32.totalorder %s507_s24, 1  ;;  %p167_p3 = scmp.ne.s32.totalorder %s657_s19, %s653_s18 }
   0x8   : > { %s832_s26 = smov (%p32_p0, %s30_s26), 0  ;;  %p168_p5 = scmp.eq.s32.totalorder %s508_s25, 1 }
   0x9   : > { %p746_p4 = por %p162_p2, %p161_p1  ;;  %s146_s29 = ssub.s32 %s669_s22, %s832_s26 }
   0xa   : > { %p511_p6 = scmp.ge.s32.totalorder %s673_s23, 1  ;;  %p149_p7 = scmp.eq.s32.totalorder %s146_s29, 0 }
   0xb   : > { %p753_p8 = por %p168_p5, %p167_p3  ;;  %p211_p9 = scmp.lt.s32.totalorder %s673_s23, 3 }
   0xc   : > { %s759_s6 = scalar_select %p149_p7, %s661_s20, %s151_s27  }
   0xd   : > { %p212_p10 = pnand %p511_p6, %p211_p9 }
   0xe   : > { %p244_p11 = scmp.lt.s32.totalorder (!%p212_p10), %s665_s21, 1  ;;  %s240_s27 = sand.u32 (!%p212_p10), 1, %s657_s19  }
   0xf   : > { %215 = sbr.rel (%p212_p10) target bundleno = 334 (0x14e), region = 40  ;;  %s512_s29 = sshll.u32 (!%p212_p10), %s240_s27, 3 }
  0x10   : > { %s529_s7 = sshll.u32 (!%p212_p10), %s665_s21, 3  ;;  %s242_s11 = scalar_lea.vmem (!%p212_p10), [#allocation2], %s512_s29 }
  0x11   : > { %s428_s12 = sshll.u32 (!%p212_p10), %s242_s11, 4  ;;  %s615_s24 = scalar_lea.hbm (!%p212_p10), %s823_s5, 16  ;;  %s429_s12 = int_to_ptr.vmem [resolvable:$true] %s428_s12 }
  0x14   : > { %v256_v0 = vld [vmem:[%s820_s2] sm:$0xff]  ;;  %v675_v1 = vmov 0   ;;  %s245_s9 = scalar_select %p244_p11, %s665_s21, 1  ;;  %vm270_vm0 = vcmask 1043456   ;;  %vm266_vm1 = vcmask 31744   ;;  %vm362_vm10 = vcmask 64512  }
  0x15   : > { %586 = vset.pattern.permute.xlu0 %v675_v1  ;;  %v356_v3 = vld [vmem:[%s822_s4] sm:$0xf]  ;;  %s413_s21 = scalar_lea.sflag [#allocation3], %s240_s27 }
  0x16   : > { %259 = vperm.xlu0 %586, %v256_v0   ;;  %s528_s10 = sshll.u32 %s245_s9, 3  ;;  %v255_v4 = vld [vmem:[%s819_s1] sm:$0xff] }
  0x17   : > { %s251_s13 = scalar_lea.vmem %s818_s0, %s528_s10  ;;  %v355_v39 = vld [vmem:[%s821_s3] sm:$0xf]  ;;  %s426_s10 = scalar_lea.hbm %s823_s5, %s529_s7 }
  0x18   : > { %v254_v2 = vld [vmem:[%s251_s13] sm:$0xff]  ;;  %s430_s13 = sshll.u32 %s426_s10, 4  ;;  %s431_s13 = int_to_ptr.hbm [resolvable:$true] %s430_s13 }
  0x19   : > { %263 = vst [vmem:[#allocation1] ss:$2 sm:$0xff] %v254_v2  ;;  %s609_s14 = sshra.s32 %s431_s13, 4  ;;  %s610_s14 = int_to_ptr.hbm [resolvable:$true] %s609_s14 }
  0x1a   : > { %s611_s15 = scalar_lea.hbm %s610_s14, 8  ;;  %p616_p1 = scmp.lt.s32.totalorder %s610_s14, %s823_s5 }
  0x1b   : > { %p612_p12 = scmp.ne.s32.totalorder %s610_s14, %s611_s15  ;;  %p617_p2 = scmp.lt.s32.totalorder %s615_s24, %s611_s15 }
  0x1d   : > { %p613_p13 = pnand %p612_p12, %p746_p4  ;;  %p618_p3 = por %p617_p2, %p616_p1 }
  0x1e   : > { %359 = vperm.xlu0 %586, %v356_v3  }
  0x1f   : > { %p614_p0 = pneg %p613_p13 }
  0x20   : > { %v264_v5 = vld.sshfl [vmem:[#allocation1] sm:$0xff pattern:$0x75316420]  ;;  %v265_v6 = vld.sshfl [vmem:[#allocation1 + $0x8] sm:$0xff pattern:$0x75316420] }
  0x21   : > { %515 = vmatpush.msk.msra.mxu0 %vm270_vm0, %v264_v5  ;;  %517 = vmatpush.msk.msra.mxu1 %vm270_vm0, %v265_v6  ;;  %p619_p5 = pnand %p618_p3, %p614_p0 }
  0x22   : > { %516 = vmatmul.msk.f32.vlgmr.msra.gmra.mxu0 %vm266_vm1, %v255_v4  ;;  %518 = vmatmul.msk.f32.vlgmr.msra.gmra.mxu1 %vm266_vm1, %v255_v4 }
  0x88   : > { %v260_v7 = vpop.permute.xlu0 %259 }
  0x90   : > { %v360_v41 = vpop.permute.xlu0 %359 }
  0x9f   : > { %v292_v8 = vpop.f32.mrf.mxu0  ;;  %v312_v9 = vpop.f32.mrf.mxu1 }
  0xa0   : > { %v293_v10 = vadd.f32 %v292_v8, %v260_v7  ;;  %v313_v11 = vadd.f32 %v312_v9, %v260_v7 }
  0xa2   : > { %v519_v12 = vmul.f32 -1.442695, %v293_v10  ;;  %v520_v13 = vmul.f32 -1.442695, %v313_v11 }
  0xa4   : > { %587 = vpow2.f32 %v519_v12 }
  0xa5   : > { %589 = vpow2.f32 %v520_v13 }
  0xaa   : > { %v588_v14 = vpop.eup %587 }
  0xab   : > { %v590_v15 = vpop.eup %589  ;;  %v321_v16 = vadd.f32 1.0, %v588_v14 }
  0xac   : > { %v322_v17 = vadd.f32 1.0, %v590_v15 }
  0xad   : > { %591 = vrcp.f32 %v321_v16  ;;  %v334_v23 = vand.u32 2147483648, %v321_v16  ;;  %v332_v26 = vand.u32 2147483647, %v321_v16  ;;  %vm328_vm4 = vweird.f32 %v321_v16 }
  0xae   : > { %593 = vrcp.f32 %v322_v17  ;;  %v349_v27 = vand.u32 2147483648, %v322_v17  ;;  %v347_v29 = vand.u32 2147483647, %v322_v17  ;;  %vm343_vm6 = vweird.f32 %v322_v17 }
  0xaf   : > { %v335_v31 = vor.u32 1.1754944e-38, %v334_v23  ;;  %vm333_vm7 = vcmp.eq.f32.partialorder %v332_v26, 8.507059e+37 }
  0xb0   : > { %v350_v34 = vor.u32 1.1754944e-38, %v349_v27  ;;  %vm348_vm9 = vcmp.eq.f32.partialorder %v347_v29, 8.507059e+37 }
  0xb3   : > { %v592_v18 = vpop.eup %591 }
  0xb4   : > { %v594_v19 = vpop.eup %593  ;;  %v324_v20 = vmul.f32 %v592_v18, %v321_v16  ;;  %vm329_vm2 = vweird.f32 %v592_v18 }
  0xb5   : > { %v339_v21 = vmul.f32 %v594_v19, %v322_v17  ;;  %vm344_vm3 = vweird.f32 %v594_v19  ;;  %vm330_vm5 = vmor %vm328_vm4, %vm329_vm2 }
  0xb6   : > { %v325_v22 = vsub.f32 1.0, %v324_v20  ;;  %vm345_vm8 = vmor %vm343_vm6, %vm344_vm3 }
  0xb7   : > { %v340_v24 = vsub.f32 1.0, %v339_v21 }
  0xb8   : > { %v326_v25 = vmul.f32 %v592_v18, %v325_v22 }
  0xb9   : > { %v341_v28 = vmul.f32 %v594_v19, %v340_v24 }
  0xba   : > { %v327_v30 = vadd.f32 %v592_v18, %v326_v25 }
  0xbb   : > { %v342_v32 = vadd.f32 %v594_v19, %v341_v28 }
  0xbc   : > { %v331_v33 = vsel %vm330_vm5, %v592_v18, %v327_v30 }
  0xbd   : > { %v336_v35 = vsel %vm333_vm7, %v335_v31, %v331_v33  ;;  %v346_v36 = vsel %vm345_vm8, %v594_v19, %v342_v32 }
  0xbe   : > { %v353_v37 = vmul.f32 %v336_v35, %v293_v10  ;;  %v351_v38 = vsel %vm348_vm9, %v350_v34, %v346_v36 }
  0xbf   : > { %v354_v40 = vmul.f32 %v351_v38, %v313_v11 }
  0xc0   : > { %381 = vmatpush.msra.mxu2 %v353_v37 }
  0xc1   : > { %401 = vmatpush.msra.mxu3 %v354_v40  ;;  %521 = vmatmul.msk.f32.vlgmr.msra.gmra.mxu2 %vm362_vm10, %v355_v39 }
  0xc2   : > { %522 = vmatmul.msk.f32.vlgmr.msra.gmra.mxu3 %vm362_vm10, %v355_v39 }
 0x144   : > { %v383_v42 = vpop.f32.mrf.mxu2 }
 0x145   : > { %v403_v43 = vpop.f32.mrf.mxu3  ;;  %v384_v45 = vadd.f32 %v383_v42, %v360_v41 }
 0x146   : > { %v404_v44 = vadd.f32 %v403_v43, %v360_v41 }
 0x148   : > { %v408_v46 = vrot.slane %v404_v44, 4 }
 0x14a   : > { %v409_v47 = vsel %vm270_vm0, %v384_v45, %v408_v46 }
 0x14b   : > { %411 = vst [vmem:[%s242_s11] sm:$0xff] %v409_v47 }
 0x14c   : > { %622 = shalt.err (!%p619_p5)
}
 0x14d   : > { %530 = dma.vmem_to_hbm [thread:$0]  (%p746_p4), %s429_s12, 128, %s431_s13, %s413_s21  }
 0x14e PF: > { %p536_p6 = scmp.ge.s32.totalorder %s673_s23, 2  ;;  %s442_s27 = sand.u32 1, %s653_s18  }
 0x14f   : > { %s443_s7 = scalar_lea.sflag [#allocation3], %s442_s27 }
 0x150   : > { %p533_p7 = pnand %p536_p6, %p753_p8 }
 0x152   : > { %p534_p9 = pneg %p533_p7 }
 0x154   : > { %648 = dma.done.wait (%p534_p9), %s443_s7, 128  }
 0x155   : > { %650 = vsyncadd (%p534_p9), %s443_s7, 4294967168  ;;  %s18_s23 = sadd.s32 1, %s673_s23   ;;  %s826_s18 = smov %s657_s19 }
 0x156   : > { %p15_p10 = scmp.ge.s32.totalorder %s18_s23, 4   ;;  %s827_s19 = smov %s661_s20 }
 0x157   : > { %s828_s20 = smov %s759_s6  ;;  %s829_s21 = smov %s669_s22 }
 0x158   : > { %s830_s22 = smov %s832_s26  ;;  %17 = sbr.rel (!%p15_p10) target bundleno = 4 (0x4), region = 75 }
 0x15d   :  { %449 = vsyncpa [#allocation3], 1 }
 0x15e   :  { %451 = vsyncpa [#allocation3 + $0x1], 1 }

// kernel: tpu_custom_call.1
= control target key start
LH: loop header
LB: loop body
LE: loop exit
PB: predicated region body
PF: predicated region fallthrough
CT: control target
= control target key end

     0   :  { %10 = vsyncpa [#allocation3], 0  ;;  %s818_s0 = inlined_call_operand.vmem [shape: f32[2,4,256], index: 0, kind: input, shape index: {}]   ;;  %s819_s1 = inlined_call_operand.vmem [shape: f32[8,4], index: 1, kind: input, shape index: {}]   ;;  %s820_s2 = inlined_call_operand.vmem [shape: f32[8,1], index: 2, kind: input, shape index: {}]   ;;  %s821_s3 = inlined_call_operand.vmem [shape: f32[4,8], index: 3, kind: input, shape index: {}]   ;;  %s822_s4 = inlined_call_operand.vmem [shape: f32[4,1], index: 4, kind: input, shape index: {}]   ;;  %s823_s5 = inlined_call_operand.hbm [shape: f32[2,4,256], index: 5, kind: output, shape index: {}]  }
   0x1   :  { %12 = vsyncpa [#allocation3 + $0x1], 0  ;;  %s706_s18 = smov 0   ;;  %s708_s19 = smov 0  }
   0x2   :  { %s710_s20 = smov 0   ;;  %s712_s21 = smov 0  }
   0x3   :  { %s714_s22 = smov 0   ;;  %s716_s23 = smov 0  }
   0x4 LB: > { %s507_s24 = sadd.s32 4294967295, %s673_s23   ;;  %s508_s25 = sadd.s32 4294967294, %s673_s23   ;;  %s673_s23 = sphi %s716_s23, %s18_s23   ;;  %s669_s22 = sphi %s714_s22, %s830_s22   ;;  %s665_s21 = sphi %s712_s21, %s829_s21   ;;  %s661_s20 = sphi %s710_s20, %s828_s20   ;;  %s657_s19 = sphi %s708_s19, %s827_s19   ;;  %s653_s18 = sphi %s706_s18, %s826_s18  }
   0x5   : > { %s30_s26 = sadd.s32 1, %s669_s22  ;;  %s151_s27 = sadd.s32 1, %s661_s20 }
   0x6   : > { %p32_p0 = scmp.ge.s32.totalorder %s30_s26, 2  ;;  %p161_p1 = scmp.ne.s32.totalorder %s661_s20, %s657_s19 }
   0x7   : > { %p162_p2 = scmp.eq.s32.totalorder %s507_s24, 1  ;;  %p167_p3 = scmp.ne.s32.totalorder %s657_s19, %s653_s18 }
   0x8   : > { %s832_s26 = smov (%p32_p0, %s30_s26), 0  ;;  %p168_p5 = scmp.eq.s32.totalorder %s508_s25, 1 }
   0x9   : > { %p746_p4 = por %p162_p2, %p161_p1  ;;  %s146_s29 = ssub.s32 %s669_s22, %s832_s26 }
   0xa   : > { %p511_p6 = scmp.ge.s32.totalorder %s673_s23, 1  ;;  %p149_p7 = scmp.eq.s32.totalorder %s146_s29, 0 }
   0xb   : > { %p753_p8 = por %p168_p5, %p167_p3  ;;  %p211_p9 = scmp.lt.s32.totalorder %s673_s23, 3 }
   0xc   : > { %s759_s6 = scalar_select %p149_p7, %s661_s20, %s151_s27  }
   0xd   : > { %p212_p10 = pnand %p511_p6, %p211_p9 }
   0xe   : > { %p244_p11 = scmp.lt.s32.totalorder (!%p212_p10), %s665_s21, 1  ;;  %s240_s27 = sand.u32 (!%p212_p10), 1, %s657_s19  }
   0xf   : > { %215 = sbr.rel (%p212_p10) target bundleno = 334 (0x14e), region = 40  ;;  %s512_s29 = sshll.u32 (!%p212_p10), %s240_s27, 3 }
  0x10   : > { %s529_s7 = sshll.u32 (!%p212_p10), %s665_s21, 3  ;;  %s242_s11 = scalar_lea.vmem (!%p212_p10), [#allocation2], %s512_s29 }
  0x11   : > { %s428_s12 = sshll.u32 (!%p212_p10), %s242_s11, 4  ;;  %s615_s24 = scalar_lea.hbm (!%p212_p10), %s823_s5, 16  ;;  %s429_s12 = int_to_ptr.vmem [resolvable:$true] %s428_s12 }
  0x14   : > { %v256_v0 = vld [vmem:[%s820_s2] sm:$0xff]  ;;  %v675_v1 = vmov 0   ;;  %s245_s9 = scalar_select %p244_p11, %s665_s21, 1  ;;  %vm270_vm0 = vcmask 1043456   ;;  %vm266_vm1 = vcmask 31744   ;;  %vm362_vm10 = vcmask 64512  }
  0x15   : > { %586 = vset.pattern.permute.xlu0 %v675_v1  ;;  %v356_v3 = vld [vmem:[%s822_s4] sm:$0xf]  ;;  %s413_s21 = scalar_lea.sflag [#allocation3], %s240_s27 }
  0x16   : > { %259 = vperm.xlu0 %586, %v256_v0   ;;  %s528_s10 = sshll.u32 %s245_s9, 3  ;;  %v255_v4 = vld [vmem:[%s819_s1] sm:$0xff] }
  0x17   : > { %s251_s13 = scalar_lea.vmem %s818_s0, %s528_s10  ;;  %v355_v39 = vld [vmem:[%s821_s3] sm:$0xf]  ;;  %s426_s10 = scalar_lea.hbm %s823_s5, %s529_s7 }
  0x18   : > { %v254_v2 = vld [vmem:[%s251_s13] sm:$0xff]  ;;  %s430_s13 = sshll.u32 %s426_s10, 4  ;;  %s431_s13 = int_to_ptr.hbm [resolvable:$true] %s430_s13 }
  0x19   : > { %263 = vst [vmem:[#allocation1] ss:$2 sm:$0xff] %v254_v2  ;;  %s609_s14 = sshra.s32 %s431_s13, 4  ;;  %s610_s14 = int_to_ptr.hbm [resolvable:$true] %s609_s14 }
  0x1a   : > { %s611_s15 = scalar_lea.hbm %s610_s14, 8  ;;  %p616_p1 = scmp.lt.s32.totalorder %s610_s14, %s823_s5 }
  0x1b   : > { %p612_p12 = scmp.ne.s32.totalorder %s610_s14, %s611_s15  ;;  %p617_p2 = scmp.lt.s32.totalorder %s615_s24, %s611_s15 }
  0x1d   : > { %p613_p13 = pnand %p612_p12, %p746_p4  ;;  %p618_p3 = por %p617_p2, %p616_p1 }
  0x1e   : > { %359 = vperm.xlu0 %586, %v356_v3  }
  0x1f   : > { %p614_p0 = pneg %p613_p13 }
  0x20   : > { %v264_v5 = vld.sshfl [vmem:[#allocation1] sm:$0xff pattern:$0x75316420]  ;;  %v265_v6 = vld.sshfl [vmem:[#allocation1 + $0x8] sm:$0xff pattern:$0x75316420] }
  0x21   : > { %515 = vmatpush.msk.msra.mxu0 %vm270_vm0, %v264_v5  ;;  %517 = vmatpush.msk.msra.mxu1 %vm270_vm0, %v265_v6  ;;  %p619_p5 = pnand %p618_p3, %p614_p0 }
  0x22   : > { %516 = vmatmul.msk.f32.vlgmr.msra.gmra.mxu0 %vm266_vm1, %v255_v4  ;;  %518 = vmatmul.msk.f32.vlgmr.msra.gmra.mxu1 %vm266_vm1, %v255_v4 }
  0x88   : > { %v260_v7 = vpop.permute.xlu0 %259 }
  0x90   : > { %v360_v41 = vpop.permute.xlu0 %359 }
  0x9f   : > { %v292_v8 = vpop.f32.mrf.mxu0  ;;  %v312_v9 = vpop.f32.mrf.mxu1 }
  0xa0   : > { %v293_v10 = vadd.f32 %v292_v8, %v260_v7  ;;  %v313_v11 = vadd.f32 %v312_v9, %v260_v7 }
  0xa2   : > { %v519_v12 = vmul.f32 -1.442695, %v293_v10  ;;  %v520_v13 = vmul.f32 -1.442695, %v313_v11 }
  0xa4   : > { %587 = vpow2.f32 %v519_v12 }
  0xa5   : > { %589 = vpow2.f32 %v520_v13 }
  0xaa   : > { %v588_v14 = vpop.eup %587 }
  0xab   : > { %v590_v15 = vpop.eup %589  ;;  %v321_v16 = vadd.f32 1.0, %v588_v14 }
  0xac   : > { %v322_v17 = vadd.f32 1.0, %v590_v15 }
  0xad   : > { %591 = vrcp.f32 %v321_v16  ;;  %v334_v23 = vand.u32 2147483648, %v321_v16  ;;  %v332_v26 = vand.u32 2147483647, %v321_v16  ;;  %vm328_vm4 = vweird.f32 %v321_v16 }
  0xae   : > { %593 = vrcp.f32 %v322_v17  ;;  %v349_v27 = vand.u32 2147483648, %v322_v17  ;;  %v347_v29 = vand.u32 2147483647, %v322_v17  ;;  %vm343_vm6 = vweird.f32 %v322_v17 }
  0xaf   : > { %v335_v31 = vor.u32 1.1754944e-38, %v334_v23  ;;  %vm333_vm7 = vcmp.eq.f32.partialorder %v332_v26, 8.507059e+37 }
  0xb0   : > { %v350_v34 = vor.u32 1.1754944e-38, %v349_v27  ;;  %vm348_vm9 = vcmp.eq.f32.partialorder %v347_v29, 8.507059e+37 }
  0xb3   : > { %v592_v18 = vpop.eup %591 }
  0xb4   : > { %v594_v19 = vpop.eup %593  ;;  %v324_v20 = vmul.f32 %v592_v18, %v321_v16  ;;  %vm329_vm2 = vweird.f32 %v592_v18 }
  0xb5   : > { %v339_v21 = vmul.f32 %v594_v19, %v322_v17  ;;  %vm344_vm3 = vweird.f32 %v594_v19  ;;  %vm330_vm5 = vmor %vm328_vm4, %vm329_vm2 }
  0xb6   : > { %v325_v22 = vsub.f32 1.0, %v324_v20  ;;  %vm345_vm8 = vmor %vm343_vm6, %vm344_vm3 }
  0xb7   : > { %v340_v24 = vsub.f32 1.0, %v339_v21 }
  0xb8   : > { %v326_v25 = vmul.f32 %v592_v18, %v325_v22 }
  0xb9   : > { %v341_v28 = vmul.f32 %v594_v19, %v340_v24 }
  0xba   : > { %v327_v30 = vadd.f32 %v592_v18, %v326_v25 }
  0xbb   : > { %v342_v32 = vadd.f32 %v594_v19, %v341_v28 }
  0xbc   : > { %v331_v33 = vsel %vm330_vm5, %v592_v18, %v327_v30 }
  0xbd   : > { %v336_v35 = vsel %vm333_vm7, %v335_v31, %v331_v33  ;;  %v346_v36 = vsel %vm345_vm8, %v594_v19, %v342_v32 }
  0xbe   : > { %v353_v37 = vmul.f32 %v336_v35, %v293_v10  ;;  %v351_v38 = vsel %vm348_vm9, %v350_v34, %v346_v36 }
  0xbf   : > { %v354_v40 = vmul.f32 %v351_v38, %v313_v11 }
  0xc0   : > { %381 = vmatpush.msra.mxu2 %v353_v37 }
  0xc1   : > { %401 = vmatpush.msra.mxu3 %v354_v40  ;;  %521 = vmatmul.msk.f32.vlgmr.msra.gmra.mxu2 %vm362_vm10, %v355_v39 }
  0xc2   : > { %522 = vmatmul.msk.f32.vlgmr.msra.gmra.mxu3 %vm362_vm10, %v355_v39 }
 0x144   : > { %v383_v42 = vpop.f32.mrf.mxu2 }
 0x145   : > { %v403_v43 = vpop.f32.mrf.mxu3  ;;  %v384_v45 = vadd.f32 %v383_v42, %v360_v41 }
 0x146   : > { %v404_v44 = vadd.f32 %v403_v43, %v360_v41 }
 0x148   : > { %v408_v46 = vrot.slane %v404_v44, 4 }
 0x14a   : > { %v409_v47 = vsel %vm270_vm0, %v384_v45, %v408_v46 }
 0x14b   : > { %411 = vst [vmem:[%s242_s11] sm:$0xff] %v409_v47 }
 0x14c   : > { %622 = shalt.err (!%p619_p5)
}
 0x14d   : > { %530 = dma.vmem_to_hbm [thread:$0]  (%p746_p4), %s429_s12, 128, %s431_s13, %s413_s21  }
 0x14e PF: > { %p536_p6 = scmp.ge.s32.totalorder %s673_s23, 2  ;;  %s442_s27 = sand.u32 1, %s653_s18  }
 0x14f   : > { %s443_s7 = scalar_lea.sflag [#allocation3], %s442_s27 }
 0x150   : > { %p533_p7 = pnand %p536_p6, %p753_p8 }
 0x152   : > { %p534_p9 = pneg %p533_p7 }
 0x154   : > { %648 = dma.done.wait (%p534_p9), %s443_s7, 128  }
 0x155   : > { %650 = vsyncadd (%p534_p9), %s443_s7, 4294967168  ;;  %s18_s23 = sadd.s32 1, %s673_s23   ;;  %s826_s18 = smov %s657_s19 }
 0x156   : > { %p15_p10 = scmp.ge.s32.totalorder %s18_s23, 4   ;;  %s827_s19 = smov %s661_s20 }
 0x157   : > { %s828_s20 = smov %s759_s6  ;;  %s829_s21 = smov %s669_s22 }
 0x158   : > { %s830_s22 = smov %s832_s26  ;;  %17 = sbr.rel (!%p15_p10) target bundleno = 4 (0x4), region = 75 }
 0x15d   :  { %449 = vsyncpa [#allocation3], 1 }
 0x15e   :  { %451 = vsyncpa [#allocation3 + $0x1], 1 }

</bundles_post_ra>
